<compile_context>
chip_gen: v6e
topology: v6e:2x2x1
jax: 0.10.0
libtpu: 0.0.40
codegen_flags: <defaults>
</compile_context>

<pallas_src>
import functools

import jax
import jax.numpy as jnp
from jax.experimental import pallas as pl
from jax.experimental.pallas import tpu as pltpu


def _sigmoid(x):
    # tanh form: one EUP push instead of exp + reciprocal (exact rewrite).
    return 0.5 * (jnp.tanh(0.5 * x) + 1.0)


# --------------------------------------------------------------------------- fused kernel
def _vae_fused_kernel(x_ref, eps_ref, u_ref,
                      w1_ref, b1_ref, w2_ref, b2_ref, wms_ref, bms_ref,
                      v1_ref, c1_ref, v2_ref, c2_ref,
                      mean_img_ref, sample_ref, logits_ref,
                      z_ref, mean_ref, std_ref, loss_ref,
                      *, latent, inv_batch, tile_latent_count):
    f32 = jnp.float32
    bf16 = jnp.bfloat16
    x = x_ref[...].astype(f32)

    # ---------------- encoder (bf16 MXU operands, f32 accumulate, f32 elementwise) -------
    h = jnp.maximum(
        jnp.dot(x.astype(bf16), w1_ref[...], preferred_element_type=f32) + b1_ref[...], 0.0)
    h = jnp.maximum(
        jnp.dot(h.astype(bf16), w2_ref[...], preferred_element_type=f32) + b2_ref[...], 0.0)
    # fused latent heads: one (HID, 2*LAT) matmul, split afterwards
    ms = jnp.dot(h.astype(bf16), wms_ref[...], preferred_element_type=f32) + bms_ref[...]
    mean = ms[:, :latent]
    log_std = ms[:, latent:]
    stddev = jnp.exp(0.5 * log_std)
    z = mean + eps_ref[...].astype(f32) * stddev
    mean_ref[...] = mean
    std_ref[...] = stddev
    z_ref[...] = z

    # ---------------- decoder -----------------------------------------------------------
    hd = jnp.maximum(
        jnp.dot(z.astype(bf16), v1_ref[...], preferred_element_type=f32) + c1_ref[...], 0.0)
    pre = jnp.dot(hd.astype(bf16), v2_ref[...], preferred_element_type=f32) + c2_ref[...]
    logits = _sigmoid(pre)          # Decoder.__call__ applies sigmoid
    mean_image = _sigmoid(logits)   # decode() applies sigmoid again (per module spec)
    logits_ref[...] = logits
    mean_img_ref[...] = mean_image
    # torch.bernoulli(p): 1 with probability p.
    sample_ref[...] = (u_ref[...].astype(f32) < mean_image).astype(f32)

    # ---------------- -ELBO partial for this batch tile (all operands still live) -------
    t = _sigmoid(x)                                   # BCE target = sigmoid(x)
    log_p = jnp.maximum(jnp.log(logits), -100.0)      # PyTorch BCE log clamp
    log_1mp = jnp.maximum(jnp.log(1.0 - logits), -100.0)
    # t*log_p + (1-t)*log_1mp  ==  log_1mp + t*(log_p - log_1mp)
    bce_tile = -jnp.sum(log_1mp + t * (log_p - log_1mp))
    var = stddev * stddev
    kl_raw = jnp.sum(var + mean * mean - 2.0 * jnp.log(stddev))   # single flat reduce
    # partial of: bce_sum + mean_b(kl_b)
    loss_ref[0, 0] = bce_tile + (0.5 * kl_raw - 0.5 * tile_latent_count) * inv_batch


# --------------------------------------------------------------------------- wrapper
def vae_forward_and_loss_pallas(x, eps, u, params, *, batch_tile=None):
    """Fused VAE forward + -ELBO.

    Returns ((mean_image, sampled_image, logits, z, mean, stddev), loss) like
    VAE.forward plus the training loss computed from (logits, x, mean, stddev).
    """
    B, IMG = x.shape
    HID = params["W1"].shape[1]
    LAT = params["Wm"].shape[1]

    # Whole batch in one tile at toy sizes; >=128-row tiles once batch grows.
    tb = batch_tile if batch_tile is not None else (B if B <= 128 else 128)
    tb = min(tb, B)
    assert B % tb == 0, (B, tb)
    n_tiles = B // tb

    f32, bf16 = jnp.float32, jnp.bfloat16
    # bf16 weights (MXU fast path on v5e/v6e/v7x, half the weight DMA); f32 biases.
    w1 = params["W1"].astype(bf16)
    w2 = params["W2"].astype(bf16)
    v1 = params["V1"].astype(bf16)
    v2 = params["V2"].astype(bf16)
    wms = jnp.concatenate([params["Wm"], params["Ws"]], axis=1).astype(bf16)
    b1 = params["b1"].astype(f32)
    b2 = params["b2"].astype(f32)
    c1 = params["c1"].astype(f32)
    c2 = params["c2"].astype(f32)
    bms = jnp.concatenate([params["bm"], params["bs"]], axis=1).astype(f32)

    row = lambda i: (i, 0)   # batch-tiled operands
    rep = lambda i: (0, 0)   # weights / biases: same block every step (stay resident)

    kernel = functools.partial(
        _vae_fused_kernel,
        latent=LAT,
        inv_batch=1.0 / B,
        tile_latent_count=float(tb * LAT),
    )

    mm_flops = 2 * B * (IMG * HID + HID * HID + HID * 2 * LAT + LAT * HID + HID * IMG)
    cost = pl.CostEstimate(
        flops=mm_flops + 20 * B * IMG + 8 * B * LAT,
        transcendentals=B * (5 * IMG + 3 * LAT),
        bytes_accessed=(4 * (2 * B * IMG + B * LAT)                      # x, u, eps
                        + 2 * (IMG * HID + HID * HID + HID * 2 * LAT
                               + LAT * HID + HID * IMG)                  # bf16 weights
                        + 4 * (3 * B * IMG + 3 * B * LAT) + 4 * n_tiles))  # outputs

    cparams = pltpu.CompilerParams(
        dimension_semantics=("parallel",),          # batch tiles are independent
        vmem_limit_bytes=32 * 1024 * 1024)          # fits v5e/v6e/v7x scoped VMEM

    outs = pl.pallas_call(
        kernel,
        grid=(n_tiles,),
        in_specs=[
            pl.BlockSpec((tb, IMG), row),            # x
            pl.BlockSpec((tb, LAT), row),            # eps
            pl.BlockSpec((tb, IMG), row),            # u
            pl.BlockSpec((IMG, HID), rep),           # W1
            pl.BlockSpec((1, HID), rep),             # b1
            pl.BlockSpec((HID, HID), rep),           # W2
            pl.BlockSpec((1, HID), rep),             # b2
            pl.BlockSpec((HID, 2 * LAT), rep),       # Wm||Ws
            pl.BlockSpec((1, 2 * LAT), rep),         # bm||bs
            pl.BlockSpec((LAT, HID), rep),           # V1
            pl.BlockSpec((1, HID), rep),             # c1
            pl.BlockSpec((HID, IMG), rep),           # V2
            pl.BlockSpec((1, IMG), rep),             # c2
        ],
        out_specs=(
            pl.BlockSpec((tb, IMG), row),            # mean_image
            pl.BlockSpec((tb, IMG), row),            # sampled_image
            pl.BlockSpec((tb, IMG), row),            # logits
            pl.BlockSpec((tb, LAT), row),            # z
            pl.BlockSpec((tb, LAT), row),            # mean
            pl.BlockSpec((tb, LAT), row),            # stddev
            pl.BlockSpec((1, 1), lambda i: (i, 0), memory_space=pltpu.SMEM),  # loss partial
        ),
        out_shape=(
            jax.ShapeDtypeStruct((B, IMG), f32),
            jax.ShapeDtypeStruct((B, IMG), f32),
            jax.ShapeDtypeStruct((B, IMG), f32),
            jax.ShapeDtypeStruct((B, LAT), f32),
            jax.ShapeDtypeStruct((B, LAT), f32),
            jax.ShapeDtypeStruct((B, LAT), f32),
            jax.ShapeDtypeStruct((n_tiles, 1), f32),
        ),
        compiler_params=cparams,
        cost_estimate=cost,
    )(x, eps, u, w1, b1, w2, b2, wms, bms, v1, c1, v2, c2)

    mean_image, sampled_image, logits, z, mean, stddev, loss_partials = outs
    loss = jnp.sum(loss_partials)
    return (mean_image, sampled_image, logits, z, mean, stddev), loss


# --------------------------------------------------------------------------- references
def vae_forward_reference(x, eps, u, params):
    relu = lambda v: jnp.maximum(v, 0.0)
    h = relu(x @ params["W1"] + params["b1"])
    h = relu(h @ params["W2"] + params["b2"])
    mean = h @ params["Wm"] + params["bm"]
    stddev = jnp.exp(0.5 * (h @ params["Ws"] + params["bs"]))
    z = mean + eps * stddev
    hd = relu(z @ params["V1"] + params["c1"])
    logits = jax.nn.sigmoid(hd @ params["V2"] + params["c2"])
    mean_image = jax.nn.sigmoid(logits)
    sampled_image = (u < mean_image).astype(jnp.float32)
    return mean_image, sampled_image, logits, z, mean, stddev


def elbo_reference(logits, y_true, mean, stddev):
    p = logits.astype(jnp.float32)
    t = jax.nn.sigmoid(y_true.astype(jnp.float32))
    bce = -jnp.sum(t * jnp.maximum(jnp.log(p), -100.0)
                   + (1.0 - t) * jnp.maximum(jnp.log(1.0 - p), -100.0))
    var = stddev.astype(jnp.float32) ** 2
    kl = jnp.sum(0.5 * (-jnp.log(var) - 1.0 + var + mean.astype(jnp.float32) ** 2), axis=-1)
    return -(jnp.mean(-bce - kl))


# --------------------------------------------------------------------------- demo
if __name__ == "__main__":
    key = jax.random.PRNGKey(0)
    keys = jax.random.split(key, 16)

    B, IMG, HID, LAT = 16, 256, 128, 32   # batch, image_shape, hid_size, latent_size

    def init(k, shape, scale=0.05):
        return scale * jax.random.normal(k, shape, dtype=jnp.float32)

    params = {
        "W1": init(keys[0], (IMG, HID)), "b1": init(keys[1], (1, HID)),
        "W2": init(keys[2], (HID, HID)), "b2": init(keys[3], (1, HID)),
        "Wm": init(keys[4], (HID, LAT)), "bm": init(keys[5], (1, LAT)),
        "Ws": init(keys[6], (HID, LAT)), "bs": init(keys[7], (1, LAT)),
        "V1": init(keys[8], (LAT, HID)), "c1": init(keys[9], (1, HID)),
        "V2": init(keys[10], (HID, IMG)), "c2": init(keys[11], (1, IMG)),
    }
    x = jax.random.normal(keys[12], (B, IMG), dtype=jnp.float32)
    eps = jax.random.normal(keys[13], (B, LAT), dtype=jnp.float32)     # torch.randn_like
    u = jax.random.uniform(keys[14], (B, IMG), dtype=jnp.float32)      # for torch.bernoulli

    (outs, loss) = jax.block_until_ready(vae_forward_and_loss_pallas(x, eps, u, params))
    mean_image, sampled_image, logits, z, mean, stddev = outs

    ref = vae_forward_reference(x, eps, u, params)
    # Training loss reference from the kernel's own (logits, mean, stddev), y_true = x.
    ref_loss = elbo_reference(logits, x, mean, stddev)

    # bf16 matmul operands -> loosened tolerances vs. the f32 reference.
    names = ("mean_image", "sampled_image", "logits", "z", "mean", "stddev")
    for name, got, want in zip(names, outs, ref):
        if name == "sampled_image":
            assert bool(jnp.all((got == 0.0) | (got == 1.0))), name
            assert bool(jnp.array_equal(got, (u < mean_image).astype(jnp.float32))), name
            continue
        assert bool(jnp.allclose(got, want, rtol=2e-2, atol=2e-2)), name
    assert bool(jnp.allclose(loss, ref_loss, rtol=1e-3, atol=1e-1)), (loss, ref_loss)

    print("KERNEL_OK")
</pallas_src>

<mosaic_0001>
module attributes {stable_mosaic.version = 11 : i64} {
  func.func @_vae_fused_kernel(%arg0: i32, %arg1: memref<16x256xf32, #tpu.memory_space<vmem>>, %arg2: memref<16x32xf32, #tpu.memory_space<vmem>>, %arg3: memref<16x256xf32, #tpu.memory_space<vmem>>, %arg4: memref<256x128xbf16, #tpu.memory_space<vmem>>, %arg5: memref<1x128xf32, #tpu.memory_space<vmem>>, %arg6: memref<128x128xbf16, #tpu.memory_space<vmem>>, %arg7: memref<1x128xf32, #tpu.memory_space<vmem>>, %arg8: memref<128x64xbf16, #tpu.memory_space<vmem>>, %arg9: memref<1x64xf32, #tpu.memory_space<vmem>>, %arg10: memref<32x128xbf16, #tpu.memory_space<vmem>>, %arg11: memref<1x128xf32, #tpu.memory_space<vmem>>, %arg12: memref<128x256xbf16, #tpu.memory_space<vmem>>, %arg13: memref<1x256xf32, #tpu.memory_space<vmem>>, %arg14: memref<16x256xf32, #tpu.memory_space<vmem>>, %arg15: memref<16x256xf32, #tpu.memory_space<vmem>>, %arg16: memref<16x256xf32, #tpu.memory_space<vmem>>, %arg17: memref<16x32xf32, #tpu.memory_space<vmem>>, %arg18: memref<16x32xf32, #tpu.memory_space<vmem>>, %arg19: memref<16x32xf32, #tpu.memory_space<vmem>>, %arg20: memref<1x1xf32, #tpu.memory_space<smem>>) attributes {dimension_semantics = [#tpu.dimension_semantics<parallel>], iteration_bounds = array<i64: 1>, scalar_prefetch = 0 : i64, scratch_operands = 0 : i64, tpu.core_type = #tpu.core_type<tc>, window_params = [{transform_indices = @transform_0, window_bounds = array<i64: 16, 256>}, {transform_indices = @transform_1, window_bounds = array<i64: 16, 32>}, {transform_indices = @transform_2, window_bounds = array<i64: 16, 256>}, {pipeline_mode = #tpu.pipeline_mode<synchronous>, transform_indices = @transform_3, window_bounds = array<i64: 256, 128>}, {pipeline_mode = #tpu.pipeline_mode<synchronous>, transform_indices = @transform_4, window_bounds = array<i64: 1, 128>}, {pipeline_mode = #tpu.pipeline_mode<synchronous>, transform_indices = @transform_5, window_bounds = array<i64: 128, 128>}, {pipeline_mode = #tpu.pipeline_mode<synchronous>, transform_indices = @transform_6, window_bounds = array<i64: 1, 128>}, {pipeline_mode = #tpu.pipeline_mode<synchronous>, transform_indices = @transform_7, window_bounds = array<i64: 128, 64>}, {pipeline_mode = #tpu.pipeline_mode<synchronous>, transform_indices = @transform_8, window_bounds = array<i64: 1, 64>}, {pipeline_mode = #tpu.pipeline_mode<synchronous>, transform_indices = @transform_9, window_bounds = array<i64: 32, 128>}, {pipeline_mode = #tpu.pipeline_mode<synchronous>, transform_indices = @transform_10, window_bounds = array<i64: 1, 128>}, {pipeline_mode = #tpu.pipeline_mode<synchronous>, transform_indices = @transform_11, window_bounds = array<i64: 128, 256>}, {pipeline_mode = #tpu.pipeline_mode<synchronous>, transform_indices = @transform_12, window_bounds = array<i64: 1, 256>}, {transform_indices = @transform_13, window_bounds = array<i64: 16, 256>}, {transform_indices = @transform_14, window_bounds = array<i64: 16, 256>}, {transform_indices = @transform_15, window_bounds = array<i64: 16, 256>}, {transform_indices = @transform_16, window_bounds = array<i64: 16, 32>}, {transform_indices = @transform_17, window_bounds = array<i64: 16, 32>}, {transform_indices = @transform_18, window_bounds = array<i64: 16, 32>}, {transform_indices = @transform_19, window_bounds = array<i64: 1, 1>}]} {
    %c0 = arith.constant 0 : index
    %c0_0 = arith.constant 0 : index
    %0 = vector.load %arg1[%c0, %c0_0] : memref<16x256xf32, #tpu.memory_space<vmem>>, vector<16x256xf32>
    %1 = arith.truncf %0 : vector<16x256xf32> to vector<16x256xbf16>
    %c0_1 = arith.constant 0 : index
    %c0_2 = arith.constant 0 : index
    %2 = vector.load %arg4[%c0_1, %c0_2] : memref<256x128xbf16, #tpu.memory_space<vmem>>, vector<256x128xbf16>
    %cst = arith.constant dense<0.000000e+00> : vector<16x128xf32>
    %3 = tpu.matmul %1, %2, %cst {dimension_numbers = #tpu.dot_dimension_numbers<[1], [0], [0], [1], [0, 0, 1, 1], [], []>} : vector<16x256xbf16>, vector<256x128xbf16>, vector<16x128xf32> -> vector<16x128xf32>
    %c0_3 = arith.constant 0 : index
    %c0_4 = arith.constant 0 : index
    %4 = vector.load %arg5[%c0_3, %c0_4] : memref<1x128xf32, #tpu.memory_space<vmem>>, vector<1x128xf32>
    %5 = vector.broadcast %4 : vector<1x128xf32> to vector<16x128xf32>
    %6 = arith.addf %3, %5 : vector<16x128xf32>
    %cst_5 = arith.constant 0.000000e+00 : f32
    %7 = vector.broadcast %cst_5 : f32 to vector<16x128xf32>
    %8 = arith.maximumf %6, %7 : vector<16x128xf32>
    %9 = arith.truncf %8 : vector<16x128xf32> to vector<16x128xbf16>
    %c0_6 = arith.constant 0 : index
    %c0_7 = arith.constant 0 : index
    %10 = vector.load %arg6[%c0_6, %c0_7] : memref<128x128xbf16, #tpu.memory_space<vmem>>, vector<128x128xbf16>
    %cst_8 = arith.constant dense<0.000000e+00> : vector<16x128xf32>
    %11 = tpu.matmul %9, %10, %cst_8 {dimension_numbers = #tpu.dot_dimension_numbers<[1], [0], [0], [1], [0, 0, 1, 1], [], []>} : vector<16x128xbf16>, vector<128x128xbf16>, vector<16x128xf32> -> vector<16x128xf32>
    %c0_9 = arith.constant 0 : index
    %c0_10 = arith.constant 0 : index
    %12 = vector.load %arg7[%c0_9, %c0_10] : memref<1x128xf32, #tpu.memory_space<vmem>>, vector<1x128xf32>
    %13 = vector.broadcast %12 : vector<1x128xf32> to vector<16x128xf32>
    %14 = arith.addf %11, %13 : vector<16x128xf32>
    %cst_11 = arith.constant 0.000000e+00 : f32
    %15 = vector.broadcast %cst_11 : f32 to vector<16x128xf32>
    %16 = arith.maximumf %14, %15 : vector<16x128xf32>
    %17 = arith.truncf %16 : vector<16x128xf32> to vector<16x128xbf16>
    %c0_12 = arith.constant 0 : index
    %c0_13 = arith.constant 0 : index
    %18 = vector.load %arg8[%c0_12, %c0_13] : memref<128x64xbf16, #tpu.memory_space<vmem>>, vector<128x64xbf16>
    %cst_14 = arith.constant dense<0.000000e+00> : vector<16x64xf32>
    %19 = tpu.matmul %17, %18, %cst_14 {dimension_numbers = #tpu.dot_dimension_numbers<[1], [0], [0], [1], [0, 0, 1, 1], [], []>} : vector<16x128xbf16>, vector<128x64xbf16>, vector<16x64xf32> -> vector<16x64xf32>
    %c0_15 = arith.constant 0 : index
    %c0_16 = arith.constant 0 : index
    %20 = vector.load %arg9[%c0_15, %c0_16] : memref<1x64xf32, #tpu.memory_space<vmem>>, vector<1x64xf32>
    %21 = vector.broadcast %20 : vector<1x64xf32> to vector<16x64xf32>
    %22 = arith.addf %19, %21 : vector<16x64xf32>
    %23 = vector.extract_strided_slice %22 {offsets = [0, 0], sizes = [16, 32], strides = [1, 1]} : vector<16x64xf32> to vector<16x32xf32>
    %24 = vector.extract_strided_slice %22 {offsets = [0, 32], sizes = [16, 32], strides = [1, 1]} : vector<16x64xf32> to vector<16x32xf32>
    %cst_17 = arith.constant 5.000000e-01 : f32
    %25 = vector.broadcast %cst_17 : f32 to vector<16x32xf32>
    %26 = arith.mulf %25, %24 : vector<16x32xf32>
    %27 = math.exp %26 : vector<16x32xf32>
    %c0_18 = arith.constant 0 : index
    %c0_19 = arith.constant 0 : index
    %28 = vector.load %arg2[%c0_18, %c0_19] : memref<16x32xf32, #tpu.memory_space<vmem>>, vector<16x32xf32>
    %29 = arith.mulf %28, %27 : vector<16x32xf32>
    %30 = arith.addf %23, %29 : vector<16x32xf32>
    %c0_20 = arith.constant 0 : index
    %c0_21 = arith.constant 0 : index
    %31 = vector.load %arg18[%c0_20, %c0_21] : memref<16x32xf32, #tpu.memory_space<vmem>>, vector<16x32xf32>
    tpu.vector_store %arg18[%c0_20, %c0_21], %23 {strides = array<i32>} : memref<16x32xf32, #tpu.memory_space<vmem>>, vector<16x32xf32>,
    %c0_22 = arith.constant 0 : index
    %c0_23 = arith.constant 0 : index
    %32 = vector.load %arg19[%c0_22, %c0_23] : memref<16x32xf32, #tpu.memory_space<vmem>>, vector<16x32xf32>
    tpu.vector_store %arg19[%c0_22, %c0_23], %27 {strides = array<i32>} : memref<16x32xf32, #tpu.memory_space<vmem>>, vector<16x32xf32>,
    %c0_24 = arith.constant 0 : index
    %c0_25 = arith.constant 0 : index
    %33 = vector.load %arg17[%c0_24, %c0_25] : memref<16x32xf32, #tpu.memory_space<vmem>>, vector<16x32xf32>
    tpu.vector_store %arg17[%c0_24, %c0_25], %30 {strides = array<i32>} : memref<16x32xf32, #tpu.memory_space<vmem>>, vector<16x32xf32>,
    %34 = arith.truncf %30 : vector<16x32xf32> to vector<16x32xbf16>
    %c0_26 = arith.constant 0 : index
    %c0_27 = arith.constant 0 : index
    %35 = vector.load %arg10[%c0_26, %c0_27] : memref<32x128xbf16, #tpu.memory_space<vmem>>, vector<32x128xbf16>
    %cst_28 = arith.constant dense<0.000000e+00> : vector<16x128xf32>
    %36 = tpu.matmul %34, %35, %cst_28 {dimension_numbers = #tpu.dot_dimension_numbers<[1], [0], [0], [1], [0, 0, 1, 1], [], []>} : vector<16x32xbf16>, vector<32x128xbf16>, vector<16x128xf32> -> vector<16x128xf32>
    %c0_29 = arith.constant 0 : index
    %c0_30 = arith.constant 0 : index
    %37 = vector.load %arg11[%c0_29, %c0_30] : memref<1x128xf32, #tpu.memory_space<vmem>>, vector<1x128xf32>
    %38 = vector.broadcast %37 : vector<1x128xf32> to vector<16x128xf32>
    %39 = arith.addf %36, %38 : vector<16x128xf32>
    %cst_31 = arith.constant 0.000000e+00 : f32
    %40 = vector.broadcast %cst_31 : f32 to vector<16x128xf32>
    %41 = arith.maximumf %39, %40 : vector<16x128xf32>
    %42 = arith.truncf %41 : vector<16x128xf32> to vector<16x128xbf16>
    %c0_32 = arith.constant 0 : index
    %c0_33 = arith.constant 0 : index
    %43 = vector.load %arg12[%c0_32, %c0_33] : memref<128x256xbf16, #tpu.memory_space<vmem>>, vector<128x256xbf16>
    %cst_34 = arith.constant dense<0.000000e+00> : vector<16x256xf32>
    %44 = tpu.matmul %42, %43, %cst_34 {dimension_numbers = #tpu.dot_dimension_numbers<[1], [0], [0], [1], [0, 0, 1, 1], [], []>} : vector<16x128xbf16>, vector<128x256xbf16>, vector<16x256xf32> -> vector<16x256xf32>
    %c0_35 = arith.constant 0 : index
    %c0_36 = arith.constant 0 : index
    %45 = vector.load %arg13[%c0_35, %c0_36] : memref<1x256xf32, #tpu.memory_space<vmem>>, vector<1x256xf32>
    %46 = vector.broadcast %45 : vector<1x256xf32> to vector<16x256xf32>
    %47 = arith.addf %44, %46 : vector<16x256xf32>
    %cst_37 = arith.constant 5.000000e-01 : f32
    %48 = vector.broadcast %cst_37 : f32 to vector<16x256xf32>
    %49 = arith.mulf %48, %47 : vector<16x256xf32>
    %50 = math.tanh %49 : vector<16x256xf32>
    %cst_38 = arith.constant 1.000000e+00 : f32
    %51 = vector.broadcast %cst_38 : f32 to vector<16x256xf32>
    %52 = arith.addf %50, %51 : vector<16x256xf32>
    %cst_39 = arith.constant 5.000000e-01 : f32
    %53 = vector.broadcast %cst_39 : f32 to vector<16x256xf32>
    %54 = arith.mulf %53, %52 : vector<16x256xf32>
    %cst_40 = arith.constant 5.000000e-01 : f32
    %55 = vector.broadcast %cst_40 : f32 to vector<16x256xf32>
    %56 = arith.mulf %55, %54 : vector<16x256xf32>
    %57 = math.tanh %56 : vector<16x256xf32>
    %cst_41 = arith.constant 1.000000e+00 : f32
    %58 = vector.broadcast %cst_41 : f32 to vector<16x256xf32>
    %59 = arith.addf %57, %58 : vector<16x256xf32>
    %cst_42 = arith.constant 5.000000e-01 : f32
    %60 = vector.broadcast %cst_42 : f32 to vector<16x256xf32>
    %61 = arith.mulf %60, %59 : vector<16x256xf32>
    %c0_43 = arith.constant 0 : index
    %c0_44 = arith.constant 0 : index
    %62 = vector.load %arg16[%c0_43, %c0_44] : memref<16x256xf32, #tpu.memory_space<vmem>>, vector<16x256xf32>
    tpu.vector_store %arg16[%c0_43, %c0_44], %54 {strides = array<i32>} : memref<16x256xf32, #tpu.memory_space<vmem>>, vector<16x256xf32>,
    %c0_45 = arith.constant 0 : index
    %c0_46 = arith.constant 0 : index
    %63 = vector.load %arg14[%c0_45, %c0_46] : memref<16x256xf32, #tpu.memory_space<vmem>>, vector<16x256xf32>
    tpu.vector_store %arg14[%c0_45, %c0_46], %61 {strides = array<i32>} : memref<16x256xf32, #tpu.memory_space<vmem>>, vector<16x256xf32>,
    %c0_47 = arith.constant 0 : index
    %c0_48 = arith.constant 0 : index
    %64 = vector.load %arg3[%c0_47, %c0_48] : memref<16x256xf32, #tpu.memory_space<vmem>>, vector<16x256xf32>
    %65 = arith.cmpf olt, %64, %61 : vector<16x256xf32>
    %66 = arith.extui %65 : vector<16x256xi1> to vector<16x256xi32>
    %67 = arith.sitofp %66 : vector<16x256xi32> to vector<16x256xf32>
    %c0_49 = arith.constant 0 : index
    %c0_50 = arith.constant 0 : index
    %68 = vector.load %arg15[%c0_49, %c0_50] : memref<16x256xf32, #tpu.memory_space<vmem>>, vector<16x256xf32>
    tpu.vector_store %arg15[%c0_49, %c0_50], %67 {strides = array<i32>} : memref<16x256xf32, #tpu.memory_space<vmem>>, vector<16x256xf32>,
    %cst_51 = arith.constant 5.000000e-01 : f32
    %69 = vector.broadcast %cst_51 : f32 to vector<16x256xf32>
    %70 = arith.mulf %69, %0 : vector<16x256xf32>
    %71 = math.tanh %70 : vector<16x256xf32>
    %cst_52 = arith.constant 1.000000e+00 : f32
    %72 = vector.broadcast %cst_52 : f32 to vector<16x256xf32>
    %73 = arith.addf %71, %72 : vector<16x256xf32>
    %cst_53 = arith.constant 5.000000e-01 : f32
    %74 = vector.broadcast %cst_53 : f32 to vector<16x256xf32>
    %75 = arith.mulf %74, %73 : vector<16x256xf32>
    %76 = math.log %54 : vector<16x256xf32>
    %cst_54 = arith.constant -1.000000e+02 : f32
    %77 = vector.broadcast %cst_54 : f32 to vector<16x256xf32>
    %78 = arith.maximumf %76, %77 : vector<16x256xf32>
    %cst_55 = arith.constant 1.000000e+00 : f32
    %79 = vector.broadcast %cst_55 : f32 to vector<16x256xf32>
    %80 = arith.subf %79, %54 : vector<16x256xf32>
    %81 = math.log %80 : vector<16x256xf32>
    %cst_56 = arith.constant -1.000000e+02 : f32
    %82 = vector.broadcast %cst_56 : f32 to vector<16x256xf32>
    %83 = arith.maximumf %81, %82 : vector<16x256xf32>
    %84 = arith.subf %78, %83 : vector<16x256xf32>
    %85 = arith.mulf %75, %84 : vector<16x256xf32>
    %86 = arith.addf %83, %85 : vector<16x256xf32>
    %87 = vector.shape_cast %86 : vector<16x256xf32> to vector<1x16x256xf32>
    %cst_57 = arith.constant dense<0.000000e+00> : vector<1xf32>
    %88 = vector.multi_reduction <add>, %87, %cst_57 [1, 2] : vector<1x16x256xf32> to vector<1xf32>
    %89 = vector.shape_cast %88 : vector<1xf32> to vector<1x1x1xf32>
    %90 = vector.extract %89[0, 0, 0] : f32 from vector<1x1x1xf32>
    %cst_58 = arith.constant 0.000000e+00 : f32
    %91 = arith.subf %cst_58, %90 : f32
    %92 = arith.mulf %27, %27 : vector<16x32xf32>
    %93 = arith.mulf %23, %23 : vector<16x32xf32>
    %94 = arith.addf %92, %93 : vector<16x32xf32>
    %95 = math.log %27 : vector<16x32xf32>
    %cst_59 = arith.constant 2.000000e+00 : f32
    %96 = vector.broadcast %cst_59 : f32 to vector<16x32xf32>
    %97 = arith.mulf %96, %95 : vector<16x32xf32>
    %98 = arith.subf %94, %97 : vector<16x32xf32>
    %99 = vector.shape_cast %98 : vector<16x32xf32> to vector<1x16x32xf32>
    %cst_60 = arith.constant dense<0.000000e+00> : vector<1xf32>
    %100 = vector.multi_reduction <add>, %99, %cst_60 [1, 2] : vector<1x16x32xf32> to vector<1xf32>
    %101 = vector.shape_cast %100 : vector<1xf32> to vector<1x1x1xf32>
    %102 = vector.extract %101[0, 0, 0] : f32 from vector<1x1x1xf32>
    %cst_61 = arith.constant 5.000000e-01 : f32
    %103 = arith.mulf %cst_61, %102 : f32
    %cst_62 = arith.constant 2.560000e+02 : f32
    %104 = arith.subf %103, %cst_62 : f32
    %cst_63 = arith.constant 6.250000e-02 : f32
    %105 = arith.mulf %104, %cst_63 : f32
    %106 = arith.addf %91, %105 : f32
    %c0_64 = arith.constant 0 : index
    %c0_65 = arith.constant 0 : index
    %107 = memref.load %arg20[%c0_64, %c0_65] : memref<1x1xf32, #tpu.memory_space<smem>>
    memref.store %106, %arg20[%c0_64, %c0_65] : memref<1x1xf32, #tpu.memory_space<smem>>
    return
  }
  func.func @transform_0(%arg0: i32) -> (i32, i32) {
    %c0_i32 = arith.constant 0 : i32
    %c0_i32_0 = arith.constant 0 : i32
    return %arg0, %c0_i32 : i32, i32
  }
  func.func @transform_1(%arg0: i32) -> (i32, i32) {
    %c0_i32 = arith.constant 0 : i32
    %c0_i32_0 = arith.constant 0 : i32
    return %arg0, %c0_i32 : i32, i32
  }
  func.func @transform_2(%arg0: i32) -> (i32, i32) {
    %c0_i32 = arith.constant 0 : i32
    %c0_i32_0 = arith.constant 0 : i32
    return %arg0, %c0_i32 : i32, i32
  }
  func.func @transform_3(%arg0: i32) -> (i32, i32) {
    %c0_i32 = arith.constant 0 : i32
    %c0_i32_0 = arith.constant 0 : i32
    %c0_i32_1 = arith.constant 0 : i32
    return %c0_i32, %c0_i32_0 : i32, i32
  }
  func.func @transform_4(%arg0: i32) -> (i32, i32) {
    %c0_i32 = arith.constant 0 : i32
    %c0_i32_0 = arith.constant 0 : i32
    %c0_i32_1 = arith.constant 0 : i32
    return %c0_i32, %c0_i32_0 : i32, i32
  }
  func.func @transform_5(%arg0: i32) -> (i32, i32) {
    %c0_i32 = arith.constant 0 : i32
    %c0_i32_0 = arith.constant 0 : i32
    %c0_i32_1 = arith.constant 0 : i32
    return %c0_i32, %c0_i32_0 : i32, i32
  }
  func.func @transform_6(%arg0: i32) -> (i32, i32) {
    %c0_i32 = arith.constant 0 : i32
    %c0_i32_0 = arith.constant 0 : i32
    %c0_i32_1 = arith.constant 0 : i32
    return %c0_i32, %c0_i32_0 : i32, i32
  }
  func.func @transform_7(%arg0: i32) -> (i32, i32) {
    %c0_i32 = arith.constant 0 : i32
    %c0_i32_0 = arith.constant 0 : i32
    %c0_i32_1 = arith.constant 0 : i32
    return %c0_i32, %c0_i32_0 : i32, i32
  }
  func.func @transform_8(%arg0: i32) -> (i32, i32) {
    %c0_i32 = arith.constant 0 : i32
    %c0_i32_0 = arith.constant 0 : i32
    %c0_i32_1 = arith.constant 0 : i32
    return %c0_i32, %c0_i32_0 : i32, i32
  }
  func.func @transform_9(%arg0: i32) -> (i32, i32) {
    %c0_i32 = arith.constant 0 : i32
    %c0_i32_0 = arith.constant 0 : i32
    %c0_i32_1 = arith.constant 0 : i32
    return %c0_i32, %c0_i32_0 : i32, i32
  }
  func.func @transform_10(%arg0: i32) -> (i32, i32) {
    %c0_i32 = arith.constant 0 : i32
    %c0_i32_0 = arith.constant 0 : i32
    %c0_i32_1 = arith.constant 0 : i32
    return %c0_i32, %c0_i32_0 : i32, i32
  }
  func.func @transform_11(%arg0: i32) -> (i32, i32) {
    %c0_i32 = arith.constant 0 : i32
    %c0_i32_0 = arith.constant 0 : i32
    %c0_i32_1 = arith.constant 0 : i32
    return %c0_i32, %c0_i32_0 : i32, i32
  }
  func.func @transform_12(%arg0: i32) -> (i32, i32) {
    %c0_i32 = arith.constant 0 : i32
    %c0_i32_0 = arith.constant 0 : i32
    %c0_i32_1 = arith.constant 0 : i32
    return %c0_i32, %c0_i32_0 : i32, i32
  }
  func.func @transform_13(%arg0: i32) -> (i32, i32) {
    %c0_i32 = arith.constant 0 : i32
    %c0_i32_0 = arith.constant 0 : i32
    return %arg0, %c0_i32 : i32, i32
  }
  func.func @transform_14(%arg0: i32) -> (i32, i32) {
    %c0_i32 = arith.constant 0 : i32
    %c0_i32_0 = arith.constant 0 : i32
    return %arg0, %c0_i32 : i32, i32
  }
  func.func @transform_15(%arg0: i32) -> (i32, i32) {
    %c0_i32 = arith.constant 0 : i32
    %c0_i32_0 = arith.constant 0 : i32
    return %arg0, %c0_i32 : i32, i32
  }
  func.func @transform_16(%arg0: i32) -> (i32, i32) {
    %c0_i32 = arith.constant 0 : i32
    %c0_i32_0 = arith.constant 0 : i32
    return %arg0, %c0_i32 : i32, i32
  }
  func.func @transform_17(%arg0: i32) -> (i32, i32) {
    %c0_i32 = arith.constant 0 : i32
    %c0_i32_0 = arith.constant 0 : i32
    return %arg0, %c0_i32 : i32, i32
  }
  func.func @transform_18(%arg0: i32) -> (i32, i32) {
    %c0_i32 = arith.constant 0 : i32
    %c0_i32_0 = arith.constant 0 : i32
    return %arg0, %c0_i32 : i32, i32
  }
  func.func @transform_19(%arg0: i32) -> (i32, i32) {
    %c0_i32 = arith.constant 0 : i32
    %c0_i32_0 = arith.constant 0 : i32
    return %arg0, %c0_i32 : i32, i32
  }
}

</mosaic_0001>

<bundles_post_ra>
// kernel: tpu_custom_call.1
= control target key start
LH: loop header
LB: loop body
LE: loop exit
PB: predicated region body
PF: predicated region fallthrough
CT: control target
= control target key end

     0   :  { %s2023_s0 = inlined_call_operand.vmem [shape: f32[16,256], index: 0, kind: input, shape index: {}]   ;;  %s2024_s1 = inlined_call_operand.hbm [shape: f32[16,32], index: 1, kind: input, shape index: {}]   ;;  %s2025_s2 = inlined_call_operand.hbm [shape: f32[16,256], index: 2, kind: input, shape index: {}]   ;;  %s2026_s3 = inlined_call_operand.hbm [shape: bf16[256,128], index: 3, kind: input, shape index: {}]   ;;  %s2027_s4 = inlined_call_operand.hbm [shape: f32[1,128], index: 4, kind: input, shape index: {}]   ;;  %s2028_s5 = inlined_call_operand.vmem [shape: bf16[128,128], index: 5, kind: input, shape index: {}]   ;;  %s2029_s6 = inlined_call_operand.hbm [shape: f32[1,128], index: 6, kind: input, shape index: {}]   ;;  %s2030_s7 = inlined_call_operand.vmem [shape: bf16[128,64], index: 7, kind: input, shape index: {}]   ;;  %s2031_s8 = inlined_call_operand.hbm [shape: f32[1,64], index: 8, kind: input, shape index: {}]   ;;  %s2032_s9 = inlined_call_operand.vmem [shape: bf16[32,128], index: 9, kind: input, shape index: {}]   ;;  %s2033_s10 = inlined_call_operand.hbm [shape: f32[1,128], index: 10, kind: input, shape index: {}]   ;;  %s2034_s11 = inlined_call_operand.hbm [shape: bf16[128,256], index: 11, kind: input, shape index: {}]   ;;  %s2035_s12 = inlined_call_operand.vmem [shape: f32[1,256], index: 12, kind: input, shape index: {}]   ;;  %s2036_s13 = inlined_call_operand.hbm [shape: f32[16,256], index: 13, kind: output, shape index: {0}]   ;;  %s2037_s14 = inlined_call_operand.hbm [shape: f32[16,256], index: 14, kind: output, shape index: {1}]   ;;  %s2038_s15 = inlined_call_operand.hbm [shape: f32[16,256], index: 15, kind: output, shape index: {2}]   ;;  %s2039_s16 = inlined_call_operand.hbm [shape: f32[16,32], index: 16, kind: output, shape index: {3}]   ;;  %s2040_s17 = inlined_call_operand.hbm [shape: f32[16,32], index: 17, kind: output, shape index: {4}]   ;;  %s2041_s18 = inlined_call_operand.hbm [shape: f32[16,32], index: 18, kind: output, shape index: {5}]   ;;  %s2042_s19 = inlined_call_operand.hbm [shape: f32[1,1], index: 19, kind: output, shape index: {6}]  }
   0x1   :  { %2046 = sst [smem:[#allocation37_spill]] %s2023_s0 }
   0x2   :  { %2047 = sst [smem:[#allocation38_spill]] %s2024_s1 }
   0x3   :  { %2048 = sst [smem:[#allocation39_spill]] %s2025_s2 }
   0x4   :  { %2049 = sst [smem:[#allocation40_spill]] %s2026_s3 }
   0x5   :  { %25 = vsyncpa [#allocation3], 0 }
   0x6   :  { %26 = vsyncpa [#allocation7], 0 }
   0x7   :  { %27 = vsyncpa [#allocation10], 0 }
   0x8   :  { %28 = vsyncpa [#allocation13], 0 }
   0x9   :  { %29 = vsyncpa [#allocation16], 0 }
   0xa   :  { %30 = vsyncpa [#allocation4], 0 }
   0xb   :  { %31 = vsyncpa [#allocation19], 0 }
   0xc   :  { %32 = vsyncpa [#allocation22], 0 }
   0xd   :  { %33 = vsyncpa [#allocation25], 0 }
   0xe   :  { %34 = vsyncpa [#allocation5], 0  ;;  %s1703_s0 = smov [#allocation6]  }
   0xf   :  { %s54_s30 = sshll.u32 %s1703_s0, 4  ;;  %s55_s30 = int_to_ptr.vmem [resolvable:$true] %s54_s30 }
  0x10   :  { %s1403_s20 = scalar_lea.vmem %s55_s30, 512  ;;  %p1408_p1 = scmp.lt.s32.totalorder %s55_s30, %s55_s30 }
  0x11   :  { %p1404_p0 = scmp.ne.s32.totalorder %s55_s30, %s1403_s20  ;;  %p1409_p2 = scmp.lt.s32.totalorder %s1403_s20, %s1403_s20 }
  0x13   :  { %p1410_p3 = por %p1409_p2, %p1408_p1 }
  0x15   :  { %p1411_p4 = pnand %p1410_p3, %p1404_p0 }
  0x17   :  { %1414 = shalt.err (!%p1411_p4)
}
  0x18   :  { %s2044_s21 = smov 256   ;;  %s1705_s1 = smov 16  }
  0x19   :  { %s2050_s23 = sld [smem:[#allocation39_spill]]  ;;  %s1706_s24 = smov [#allocation9]  }
  0x1a   :  { %s79_s25 = sshll.u32 %s1706_s24, 4  ;;  %s1707_s3 = smov [#allocation12]   ;;  %s80_s25 = int_to_ptr.vmem [resolvable:$true] %s79_s25 }
  0x1b   :  { %s103_s26 = sshll.u32 %s1707_s3, 4  ;;  %s1423_s27 = scalar_lea.vmem %s80_s25, 16  ;;  %s104_s26 = int_to_ptr.vmem [resolvable:$true] %s103_s26 }
  0x1c   :  { %p1424_p5 = scmp.ne.s32.totalorder %s80_s25, %s1423_s27  ;;  %s1427_s28 = scalar_lea.vmem %s80_s25, 32 }
  0x1d   :  { %p1428_p6 = scmp.lt.s32.totalorder %s80_s25, %s80_s25  ;;  %p1429_p7 = scmp.lt.s32.totalorder %s1427_s28, %s1423_s27 }
  0x1f   :  { %60 = dma.hbm_to_vmem [thread:$0]  %s2050_s23, 512, %s55_s30, [#allocation7], %s2044_s21, %s2044_s21, %s1705_s1  }
  0x20   :  { %p1430_p8 = por %p1429_p7, %p1428_p6 }
  0x22   :  { %p1431_p9 = pnand %p1430_p8, %p1424_p5 }
  0x24   :  { %1434 = shalt.err (!%p1431_p9)
}
  0x25   :  { %82 = dma.hbm_to_vmem [thread:$0]  %s2027_s4, 16, %s80_s25, [#allocation10]  }
  0x26   :  { %s1443_s20 = scalar_lea.vmem %s104_s26, 16  ;;  %s1447_s30 = scalar_lea.vmem %s104_s26, 32 }
  0x27   :  { %p1444_p10 = scmp.ne.s32.totalorder %s104_s26, %s1443_s20  ;;  %p1448_p11 = scmp.lt.s32.totalorder %s104_s26, %s104_s26 }
  0x28   :  { %p1449_p12 = scmp.lt.s32.totalorder %s1447_s30, %s1443_s20 }
  0x2a   :  { %p1450_p13 = por %p1449_p12, %p1448_p11 }
  0x2c   :  { %p1451_p0 = pnand %p1450_p13, %p1444_p10 }
  0x2e   :  { %1454 = shalt.err (!%p1451_p0)
}
  0x2f   :  { %106 = dma.hbm_to_vmem [thread:$0]  %s2031_s8, 16, %s104_s26, [#allocation13]  }
  0x30   :  { %s1708_s23 = smov [#allocation2]  }
  0x31   :  { %s42_s24 = sshll.u32 %s1708_s23, 4  ;;  %s43_s24 = int_to_ptr.vmem [resolvable:$true] %s42_s24 }
  0x32   :  { %s1463_s3 = scalar_lea.vmem %s43_s24, 256  ;;  %p1468_p2 = scmp.lt.s32.totalorder %s43_s24, %s43_s24 }
  0x33   :  { %p1464_p1 = scmp.ne.s32.totalorder %s43_s24, %s1463_s3  ;;  %p1469_p3 = scmp.lt.s32.totalorder %s1463_s3, %s1463_s3 }
  0x35   :  { %p1470_p4 = por %p1469_p3, %p1468_p2 }
  0x37   :  { %p1471_p5 = pnand %p1470_p4, %p1464_p1 }
  0x39   :  { %1474 = shalt.err (!%p1471_p5)
}
  0x3a   :  { %s1709_s4 = smov 128   ;;  %s1710_s25 = smov 8  }
  0x3b   :  { %s2051_s29 = sld [smem:[#allocation38_spill]]  ;;  %s1711_s8 = smov [#allocation8]  }
  0x3c   :  { %s66_s26 = sshll.u32 %s1711_s8, 4  ;;  %s67_s26 = int_to_ptr.vmem [resolvable:$true] %s66_s26 }
  0x3d   :  { %s1483_s0 = scalar_lea.vmem %s67_s26, 2048  ;;  %p1488_p7 = scmp.lt.s32.totalorder %s67_s26, %s67_s26 }
  0x3e   :  { %p1484_p6 = scmp.ne.s32.totalorder %s67_s26, %s1483_s0  ;;  %p1489_p8 = scmp.lt.s32.totalorder %s1483_s0, %s1483_s0 }
  0x40   :  { %p1490_p9 = por %p1489_p8, %p1488_p7 }
  0x41   :  { %48 = dma.hbm_to_vmem [thread:$0]  %s2051_s29, 256, %s43_s24, [#allocation3], %s1709_s4, %s1709_s4, %s1710_s25  }
  0x42   :  { %p1491_p10 = pnand %p1490_p9, %p1484_p6 }
  0x44   :  { %1494 = shalt.err (!%p1491_p10)
}
  0x45   :  { %s1712_s20 = smov 64   ;;  %s1713_s30 = smov 4  }
  0x46   :  { %s2052_s23 = sld [smem:[#allocation40_spill]]  ;;  %s1714_s3 = smov [#allocation11]  }
  0x47   :  { %s91_s21 = sshll.u32 %s1714_s3, 4  ;;  %s1715_s24 = smov [#allocation14]   ;;  %s92_s21 = int_to_ptr.vmem [resolvable:$true] %s91_s21 }
  0x48   :  { %s115_s27 = sshll.u32 %s1715_s24, 4  ;;  %s1503_s28 = scalar_lea.vmem %s92_s21, 16  ;;  %s116_s27 = int_to_ptr.vmem [resolvable:$true] %s115_s27 }
  0x49   :  { %p1504_p11 = scmp.ne.s32.totalorder %s92_s21, %s1503_s28  ;;  %s1507_s29 = scalar_lea.vmem %s92_s21, 32 }
  0x4a   :  { %p1508_p12 = scmp.lt.s32.totalorder %s92_s21, %s92_s21  ;;  %p1509_p13 = scmp.lt.s32.totalorder %s1507_s29, %s1503_s28 }
  0x4c   :  { %72 = dma.hbm_to_vmem [thread:$0]  %s2052_s23, 2048, %s67_s26, [#allocation7], %s1712_s20, %s1712_s20, %s1713_s30  }
  0x4d   :  { %p1510_p0 = por %p1509_p13, %p1508_p12 }
  0x4f   :  { %p1511_p1 = pnand %p1510_p0, %p1504_p11 }
  0x51   :  { %1514 = shalt.err (!%p1511_p1)
}
  0x52   :  { %94 = dma.hbm_to_vmem [thread:$0]  %s2029_s6, 16, %s92_s21, [#allocation10]  }
  0x53   :  { %s1523_s22 = scalar_lea.vmem %s116_s27, 16  ;;  %s1527_s26 = scalar_lea.vmem %s116_s27, 32 }
  0x54   :  { %p1524_p2 = scmp.ne.s32.totalorder %s116_s27, %s1523_s22  ;;  %p1528_p3 = scmp.lt.s32.totalorder %s116_s27, %s116_s27 }
  0x55   :  { %p1529_p4 = scmp.lt.s32.totalorder %s1527_s26, %s1523_s22 }
  0x57   :  { %p1530_p5 = por %p1529_p4, %p1528_p3 }
  0x59   :  { %p1531_p6 = pnand %p1530_p5, %p1524_p2 }
  0x5b   :  { %1534 = shalt.err (!%p1531_p6)
}
  0x5c   :  { %118 = dma.hbm_to_vmem [thread:$0]  %s2033_s10, 16, %s116_s27, [#allocation13]  }
  0x5d   :  { %s1716_s2 = smov [#allocation15]  }
  0x5e   :  { %s124_s23 = sshll.u32 %s1716_s2, 4  ;;  %s125_s23 = int_to_ptr.vmem [resolvable:$true] %s124_s23 }
  0x5f   :  { %s1543_s3 = scalar_lea.vmem %s125_s23, 2048  ;;  %p1548_p8 = scmp.lt.s32.totalorder %s125_s23, %s125_s23 }
  0x60   :  { %p1544_p7 = scmp.ne.s32.totalorder %s125_s23, %s1543_s3  ;;  %p1549_p9 = scmp.lt.s32.totalorder %s1543_s3, %s1543_s3 }
  0x62   :  { %p1550_p10 = por %p1549_p9, %p1548_p8 }
  0x64   :  { %p1551_p11 = pnand %p1550_p10, %p1544_p7 }
  0x66   :  { %1554 = shalt.err (!%p1551_p11)
}
  0x67   :  { %130 = dma.hbm_to_vmem [thread:$0]  %s2034_s11, 2048, %s125_s23, [#allocation16], %s1709_s4, %s1709_s4, %s1710_s25  }
  0x68   :  { %1683 = dma.done.wait [#allocation3], 256  }
  0x69   :  { %1684 = vsyncadd [#allocation3], 4294967040 }
  0x6a   :  { %1685 = dma.done.wait [#allocation7], 2560  }
  0x6b   :  { %1686 = vsyncadd [#allocation7], 4294964736 }
  0x6c   :  { %1687 = dma.done.wait [#allocation10], 32  }
  0x6d   :  { %1688 = vsyncadd [#allocation10], 4294967264 }
  0x6e   :  { %1689 = dma.done.wait [#allocation13], 32  }
  0x6f   :  { %1690 = vsyncadd [#allocation13], 4294967264 }
  0x70   :  { %1691 = dma.done.wait [#allocation16], 2048  }
  0x71   :  { %1692 = vsyncadd [#allocation16], 4294965248  ;;  %v1717_v0 = vmov 0.0   ;;  %v1289_v1 = vld [vmem:[#allocation8 + $0x78] sm:$0xff]   ;;  %v1291_v3 = vld [vmem:[#allocation8 + $0x70] sm:$0xff]   ;;  %s2053_s24 = sld [smem:[#allocation37_spill]] }
  0x72   :  { %1211 = vmatprep.subr.bf16.mxu1 %v1717_v0  ;;  %v1290_v2 = vld [vmem:[#allocation8 + $0x38] sm:$0xff]   ;;  %1168 = vmatprep.subr.bf16.mxu0 %v1289_v1  ;;  %v1292_v4 = vld [vmem:[#allocation8 + $0x30] sm:$0xff]   ;;  %v1293_v5 = vld [vmem:[#allocation8 + $0x68] sm:$0xff]   ;;  %vm1718_vm0 = vmmov 0   ;;  %vm590_vm1 = vcmask 261120   ;;  %s1720_s20 = smov 96  }
  0x73   :  { %1169 = vmatpush3.bf16.msra.mxu0 %v1290_v2  ;;  %v1294_v6 = vld [vmem:[#allocation8 + $0x28] sm:$0xff]   ;;  %v1295_v7 = vld [vmem:[#allocation8 + $0x60] sm:$0xff]   ;;  %v1297_v9 = vld [vmem:[#allocation8 + $0x58] sm:$0xff]   ;;  %1227 = vmatprep.mubr.msk.bf16.mxu1 %vm1718_vm0, %v1717_v0  ;;  %s1723_s2 = smov [#allocation21]  }
  0x74   :  { %1170 = vmatprep.subr.bf16.mxu0 %v1291_v3  ;;  %v1296_v8 = vld [vmem:[#allocation8 + $0x20] sm:$0xff]   ;;  %v1298_v10 = vld [vmem:[#allocation8 + $0x18] sm:$0xff]   ;;  %v1299_v11 = vld [vmem:[#allocation8 + $0x50] sm:$0xff]   ;;  %s1037_s23 = sshll.u32 %s1723_s2, 4  ;;  %s1038_s23 = int_to_ptr.vmem [resolvable:$true] %s1037_s23 }
  0x75   :  { %v1300_v14 = vld [vmem:[#allocation8 + $0x10] sm:$0xff]   ;;  %v1305_v16 = vld [vmem:[%s2028_s5 + $0x38] sm:$0xff]   ;;  %v1306_v18 = vld [vmem:[%s2028_s5 + $0x30] sm:$0xff]  }
  0x76   :  { %v1301_v17 = vld [vmem:[#allocation8 + $0x48] sm:$0xff]   ;;  %1212 = vmatpush3.bf16.msra.mxu1 %v1305_v16  ;;  %v1303_v20 = vld [vmem:[#allocation8 + $0x40] sm:$0xff]   ;;  %v1307_v21 = vld [vmem:[%s2028_s5 + $0x28] sm:$0xff]  }
  0x77   :  { %1171 = vmatpush3.bf16.msra.mxu0 %v1292_v4  ;;  %v1866_v12 = vld [vmem:[%s2053_s24 + $0x8] sm:$0xff]  ;;  %v1871_v13 = vld [vmem:[%s2053_s24 + $0x18] sm:$0xff]  ;;  %1213 = vmatprep.subr.bf16.mxu1 %v1717_v0  ;;  %v1304_v22 = vld [vmem:[#allocation8] sm:$0xff]  }
  0x78   :  { %1172 = vmatprep.subr.bf16.mxu0 %v1293_v5  ;;  %v163_v15 = vpack.c.bf16 %v1871_v13, %v1866_v12  ;;  %v1302_v19 = vld [vmem:[#allocation8 + $0x8] sm:$0xff]   ;;  %v1888_v23 = vld [vmem:[%s2053_s24] sm:$0xff]  ;;  %v1893_v24 = vld [vmem:[%s2053_s24 + $0x10] sm:$0xff] }
  0x79   :  { %v1308_v25 = vld [vmem:[%s2028_s5 + $0x20] sm:$0xff]   ;;  %v162_v26 = vpack.c.bf16 %v1893_v24, %v1888_v23  ;;  %v1309_v27 = vld [vmem:[%s2028_s5 + $0x18] sm:$0xff]   ;;  %v1310_v28 = vld [vmem:[%s2028_s5 + $0x10] sm:$0xff]  }
  0x7a   :  { %331 = vmatprep.mubr.bf16.mxu0 %v163_v15  ;;  %1214 = vmatpush3.bf16.msra.mxu1 %v1306_v18  ;;  %v1311_v29 = vld [vmem:[%s2028_s5 + $0x8] sm:$0xff]   ;;  %v1312_v30 = vld [vmem:[%s2028_s5] sm:$0xff]   ;;  %v1313_v31 = vld [vmem:[%s2030_s7 + $0x38] sm:$0xff]  }
  0x7b   :  { %1173 = vmatpush3.bf16.msra.mxu0 %v1294_v6  ;;  %1215 = vmatprep.subr.bf16.mxu1 %v1717_v0  ;;  %v1314_v32 = vld [vmem:[%s2030_s7 + $0x30] sm:$0xff]   ;;  %v1315_v33 = vld [vmem:[%s2030_s7 + $0x28] sm:$0xff]   ;;  %v1316_v34 = vld [vmem:[%s2030_s7 + $0x20] sm:$0xff]  }
  0x7c   :  { %1174 = vmatprep.subr.bf16.mxu0 %v1295_v7  ;;  %v1317_v35 = vld [vmem:[%s2030_s7 + $0x18] sm:$0xff]   ;;  %v1108_v39 = vld [vmem:[#allocation9] ss:$0 sm:$0xff]  ;;  %v1319_v49 = vld [vmem:[%s2030_s7 + $0x8] sm:$0xff]  }
  0x7d   :  { %v1318_v48 = vld [vmem:[%s2030_s7 + $0x10] sm:$0xff]   ;;  %v1320_v50 = vld [vmem:[%s2030_s7] sm:$0xff]   ;;  %s1719_s7 = smov 32  }
  0x7e   :  { %1216 = vmatpush3.bf16.msra.mxu1 %v1307_v21  ;;  %v1125_v51 = vld [vmem:[#allocation11] ss:$0 sm:$0xff]  ;;  %v1134_v61 = vld [vmem:[#allocation12] ss:$0 sm:$0xff] }
  0x7f   :  { %1175 = vmatpush3.bf16.msra.mxu0 %v1296_v8  ;;  %1217 = vmatprep.subr.bf16.mxu1 %v1717_v0  ;;  %v1325_v21 = vld [vmem:[#allocation15 + $0x74] ss:$8 sps:$4 sm:$0xff]  }
  0x80   :  { %1176 = vmatprep.subr.bf16.mxu0 %v1297_v9 }
  0x82   :  { %1218 = vmatpush3.bf16.msra.mxu1 %v1308_v25 }
  0x83   :  { %1177 = vmatpush3.bf16.msra.mxu0 %v1298_v10  ;;  %1219 = vmatprep.subr.bf16.mxu1 %v1717_v0 }
  0x84   :  { %1178 = vmatprep.subr.bf16.mxu0 %v1299_v11  ;;  %v1321_v11 = vld [vmem:[%s2032_s9 + $0x8] sm:$0xff]  }
  0x86   :  { %1220 = vmatpush3.bf16.msra.mxu1 %v1309_v27 }
  0x87   :  { %1179 = vmatpush3.bf16.msra.mxu0 %v1300_v14  ;;  %1221 = vmatprep.subr.bf16.mxu1 %v1717_v0  ;;  %v1322_v14 = vld [vmem:[%s2032_s9] sm:$0xff]  }
  0x88   :  { %1180 = vmatprep.subr.bf16.mxu0 %v1301_v17 }
  0x8a   :  { %1222 = vmatpush3.bf16.msra.mxu1 %v1310_v28 }
  0x8b   :  { %1181 = vmatpush3.bf16.msra.mxu0 %v1302_v19  ;;  %1223 = vmatprep.subr.bf16.mxu1 %v1717_v0 }
  0x8c   :  { %1182 = vmatprep.subr.bf16.mxu0 %v1303_v20 }
  0x8e   :  { %1224 = vmatpush3.bf16.msra.mxu1 %v1311_v29 }
  0x8f   :  { %1183 = vmatpush3.bf16.msra.mxu0 %v1304_v22  ;;  %1225 = vmatprep.subr.bf16.mxu1 %v1717_v0 }
  0x90   :  { %1231 = vmatprep.subr.bf16.mxu0 %v1717_v0 }
  0x92   :  { %332 = vmatmul.mubr.bf16.vlgmr.msra.gmra.mxu0 %v162_v26  ;;  %1226 = vmatpush3.bf16.msra.mxu1 %v1312_v30 }
  0x93   :  { %1247 = vmatprep.mubr.msk.bf16.mxu0 %vm1718_vm0, %v1717_v0  ;;  %1251 = vmatprep.subr.bf16.mxu1 %v1717_v0 }
  0x94   :  { %1232 = vmatpush3.bf16.msra.mxu0 %v1313_v31 }
  0x95   :  { %1233 = vmatprep.subr.bf16.mxu0 %v1717_v0 }
  0x98   :  { %1234 = vmatpush3.bf16.msra.mxu0 %v1314_v32 }
  0x99   :  { %1235 = vmatprep.subr.bf16.mxu0 %v1717_v0 }
  0x9c   :  { %1236 = vmatpush3.bf16.msra.mxu0 %v1315_v33 }
  0x9d   :  { %1237 = vmatprep.subr.bf16.mxu0 %v1717_v0 }
  0xa0   :  { %1238 = vmatpush3.bf16.msra.mxu0 %v1316_v34  ;;  %v576_v34 = vld [vmem:[#allocation2] sm:$0xff] }
  0xa1   :  { %1239 = vmatprep.subr.bf16.mxu0 %v1717_v0 }
  0xa4   :  { %1240 = vmatpush3.bf16.msra.mxu0 %v1317_v35 }
  0xa5   :  { %1241 = vmatprep.subr.bf16.mxu0 %v1717_v0 }
  0xa8   :  { %1242 = vmatpush3.bf16.msra.mxu0 %v1318_v48  ;;  %v1334_v48 = vld [vmem:[#allocation15 + $0x44] ss:$8 sps:$4 sm:$0xff]  }
  0xa9   :  { %1243 = vmatprep.subr.bf16.mxu0 %v1717_v0 }
  0xac   :  { %1244 = vmatpush3.bf16.msra.mxu0 %v1319_v49  ;;  %v1332_v49 = vld [vmem:[#allocation15 + $0x40] ss:$8 sps:$4 sm:$0xff]  }
  0xad   :  { %1245 = vmatprep.subr.bf16.mxu0 %v1717_v0 }
  0xb0   :  { %1246 = vmatpush3.bf16.msra.mxu0 %v1320_v50  ;;  %v1337_v50 = vld [vmem:[#allocation15 + $0x34] ss:$8 sps:$4 sm:$0xff]  }
 0x152   :  { %v1184_v36 = vpop.f32.mrf.mxu0 }
 0x154   :  { %v1185_v37 = vpop.f32.mrf.mxu0 }
 0x155   :  { %v1186_v38 = vadd.f32 %v1185_v37, %v1184_v36  ;;  %v577_v37 = vld [vmem:[#allocation2 + $0x8] sm:$0xff] }
 0x156   :  { %v1187_v40 = vpop.f32.mrf.mxu0 }
 0x157   :  { %v334_v42 = vadd.f32 %v1186_v38, %v1108_v39 }
 0x158   :  { %v1188_v41 = vpop.f32.mrf.mxu0 }
 0x159   :  { %v1189_v43 = vadd.f32 %v1188_v41, %v1187_v40  ;;  %v340_v45 = vmax.f32 %v334_v42, 0.0  ;;  %v1323_v42 = vld [vmem:[#allocation15 + $0x70] ss:$8 sps:$4 sm:$0xff]  }
 0x15b   :  { %v337_v44 = vadd.f32 %v1189_v43, %v1108_v39 }
 0x15d   :  { %v341_v46 = vmax.f32 %v337_v44, 0.0  ;;  %v1328_v44 = vld [vmem:[#allocation15 + $0x64] ss:$8 sps:$4 sm:$0xff]  }
 0x15f   :  { %v342_v47 = vpack.c.bf16 %v341_v46, %v340_v45  ;;  %v1326_v45 = vld [vmem:[#allocation15 + $0x60] ss:$8 sps:$4 sm:$0xff]   ;;  %v1331_v46 = vld [vmem:[#allocation15 + $0x54] ss:$8 sps:$4 sm:$0xff]  }
 0x161   :  { %1228 = vmatmul.mubr.bf16.vlgmr.msra.gmra.mxu1 %v342_v47  ;;  %v1329_v47 = vld [vmem:[#allocation15 + $0x50] ss:$8 sps:$4 sm:$0xff]  }
 0x162   :  { %1255 = vmatprep.mubr.msk.bf16.mxu1 %vm1718_vm0, %v1717_v0  ;;  %1252 = vmatpush3.bf16.msra.mxu1 %v1321_v11  ;;  %v686_v11 = vlaneseq }
 0x163   :  { %1253 = vmatprep.subr.bf16.mxu1 %v1717_v0 }
 0x166   :  { %1254 = vmatpush3.bf16.msra.mxu1 %v1322_v14  ;;  %v687_v14 = vshrl.u32 %v686_v11, 7 }
 0x167   :  { %776 = vmatprep.subr.bf16.mxu1 %v1325_v21 }
 0x221   :  { %v448_v52 = vpop.f32.mrf.mxu1 }
 0x222   :  { %v449_v54 = vadd.f32 %v1125_v51, %v448_v52  ;;  %v1340_v52 = vld [vmem:[#allocation15 + $0x24] ss:$8 sps:$4 sm:$0xff]  }
 0x223   :  { %v1229_v53 = vpop.f32.mrf.mxu1 }
 0x224   :  { %v455_v58 = vmax.f32 %v449_v54, 0.0  ;;  %v1338_v53 = vld [vmem:[#allocation15 + $0x20] ss:$8 sps:$4 sm:$0xff]   ;;  %v1343_v54 = vld [vmem:[#allocation15 + $0x14] ss:$8 sps:$4 sm:$0xff]  }
 0x225   :  { %v451_v55 = vpop.f32.mrf.mxu1 }
 0x226   :  { %v452_v56 = vadd.f32 %v1125_v51, %v451_v55  ;;  %v1335_v51 = vld [vmem:[#allocation15 + $0x30] ss:$8 sps:$4 sm:$0xff]  }
 0x227   :  { %v1230_v57 = vpop.f32.mrf.mxu1  ;;  %v1341_v55 = vld [vmem:[#allocation15 + $0x10] ss:$8 sps:$4 sm:$0xff]  }
 0x228   :  { %v456_v59 = vmax.f32 %v452_v56, 0.0  ;;  %v1346_v56 = vld [vmem:[#allocation15 + $0x4] ss:$8 sps:$4 sm:$0xff]   ;;  %v1344_v57 = vld [vmem:[#allocation15] ss:$8 sps:$4 sm:$0xff]  }
 0x22a   :  { %v457_v60 = vpack.c.bf16 %v456_v59, %v455_v58  ;;  %v1721_v58 = vmov 0  }
 0x22c   :  { %1248 = vmatmul.mubr.bf16.vlgmr.msra.gmra.mxu0 %v457_v60 }
 0x2ec   :  { %v563_v62 = vpop.f32.mrf.mxu0 }
 0x2ed   :  { %v564_v63 = vadd.f32 %v1134_v61, %v563_v62 }
 0x2ee   :  { %v1249_v1 = vpop.f32.mrf.mxu0 }
 0x2ef   :  { %v570_v2 = vmul.f32 0.5, %v564_v63  ;;  %v950_v3 = vmul.f32 %v564_v63, %v564_v63  ;;  %591 = vst.msk [vmem:[#allocation23] sm:$0xff] %vm590_vm1, %v564_v63  ;;  %v1143_v1 = vld [vmem:[#allocation14] ss:$0 sm:$0xff] }
 0x2f0   :  { %v566_v4 = vpop.f32.mrf.mxu0 }
 0x2f1   :  { %v572_v5 = vmul.f32 1.442695, %v570_v2  ;;  %v567_v6 = vadd.f32 %v1134_v61, %v566_v4  ;;  %954 = vrot.lane.b32.xlu1 %v950_v3, %s1719_s7 }
 0x2f2   :  { %v1250_v7 = vpop.f32.mrf.mxu0 }
 0x2f3   :  { %1347 = vpow2.f32 %v572_v5  ;;  %v571_v8 = vmul.f32 0.5, %v567_v6  ;;  %v951_v9 = vmul.f32 %v567_v6, %v567_v6  ;;  %592 = vst.msk [vmem:[#allocation23 + $0x8] sm:$0xff] %vm590_vm1, %v567_v6 }
 0x2f5   :  { %v574_v10 = vmul.f32 1.442695, %v571_v8  ;;  %956 = vrot.lane.b32.xlu1 %v951_v9, %s1719_s7 }
 0x2f7   :  { %1349 = vpow2.f32 %v574_v10 }
 0x300   :  { %v1348_v15 = vpop.eup %1347 }
 0x301   :  { %580 = vrot.lane.b32.xlu0 %v1348_v15, %s1720_s20  ;;  %1351 = vlog2.f32 %v1348_v15  ;;  %v948_v20 = vmul.f32 %v1348_v15, %v1348_v15  ;;  %v688_v15 = vsub.s32 0, %v687_v14 }
 0x304   :  { %v1350_v16 = vpop.eup %1349 }
 0x305   :  { %582 = vrot.lane.b32.xlu0 %v1350_v16, %s1720_s20  ;;  %1353 = vlog2.f32 %v1350_v16  ;;  %v949_v29 = vmul.f32 %v1350_v16, %v1350_v16  ;;  %v684_v16 = vld [vmem:[%s2035_s12] sm:$0x3]  ;;  %s1722_s12 = smov [#allocation18]  }
 0x306   :  { %s1013_s5 = sshll.u32 %s1722_s12, 4  ;;  %s1014_s5 = int_to_ptr.vmem [resolvable:$true] %s1013_s5 }
 0x307   :  { %s1555_s3 = scalar_lea.vmem %s1014_s5, 512  ;;  %p1560_p13 = scmp.lt.s32.totalorder %s1014_s5, %s1014_s5 }
 0x308   :  { %p1556_p12 = scmp.ne.s32.totalorder %s1014_s5, %s1555_s3  ;;  %p1561_p0 = scmp.lt.s32.totalorder %s1555_s3, %s1555_s3 }
 0x30a   :  { %p1562_p1 = por %p1561_p0, %p1560_p13 }
 0x30c   :  { %p1563_p2 = pnand %p1562_p1, %p1556_p12 }
 0x30e   :  { %v1352_v17 = vpop.eup %1351 }
 0x30f   :  { %v963_v18 = vmul.f32 0.6931472, %v1352_v17  ;;  %v692_v17 = vsub.s32 1, %v687_v14 }
 0x311   :  { %v966_v26 = vmul.f32 2.0, %v963_v18  ;;  %v689_v18 = vrot.slane %v684_v16, %v688_v15 }
 0x312   :  { %v1354_v19 = vpop.eup %1353 }
 0x313   :  { %v965_v27 = vmul.f32 0.6931472, %v1354_v19  ;;  %v693_v19 = vrot.slane %v684_v16, %v692_v17 }
 0x315   :  { %v967_v32 = vmul.f32 2.0, %v965_v27 }
 0x363   :  { %v955_v22 = vpop.permute.xlu1 %954 }
 0x364   :  { %v960_v25 = vadd.f32 %v955_v22, %v948_v20 }
 0x366   :  { %v968_v28 = vsub.f32 %v960_v25, %v966_v26 }
 0x367   :  { %v957_v30 = vpop.permute.xlu1 %956 }
 0x368   :  { %v961_v31 = vadd.f32 %v957_v30, %v949_v29  ;;  %972 = vrot.lane.b32.xlu0 %v968_v28, %s1720_s20 }
 0x36a   :  { %v969_v33 = vsub.f32 %v961_v31, %v967_v32 }
 0x36c   :  { %974 = vrot.lane.b32.xlu1 %v969_v33, %s1720_s20 }
 0x373   :  { %v581_v35 = vpop.permute.xlu0 %580 }
 0x374   :  { %v586_v36 = vmul.f32 %v581_v35, %v576_v34  ;;  %593 = vst.msk [vmem:[#allocation24] sm:$0xff] %vm590_vm1, %v581_v35  ;;  %v880_v34 = vmul.f32 0.5, %v1866_v12  ;;  %v882_v35 = vmul.f32 0.5, %v1871_v13 }
 0x376   :  { %v588_v38 = vadd.f32 %v586_v36, %v564_v63 }
 0x377   :  { %v583_v39 = vpop.permute.xlu0 %582 }
 0x378   :  { %595 = vst.msk [vmem:[#allocation21] sm:$0xff] %vm590_vm1, %v588_v38  ;;  %v587_v40 = vmul.f32 %v583_v39, %v577_v37  ;;  %594 = vst.msk [vmem:[#allocation24 + $0x8] sm:$0xff] %vm590_vm1, %v583_v39  ;;  %v879_v37 = vmul.f32 0.5, %v1888_v23 }
 0x37a   :  { %v589_v41 = vadd.f32 %v587_v40, %v567_v6 }
 0x37c   :  { %v597_v43 = vpack.c.bf16 %v589_v41, %v588_v38  ;;  %596 = vst.msk [vmem:[#allocation21 + $0x8] sm:$0xff] %vm590_vm1, %v589_v41  ;;  %v881_v38 = vmul.f32 0.5, %v1893_v24 }
 0x37e   :  { %1256 = vmatmul.mubr.msk.bf16.vlgmr.msra.gmra.mxu1 %vm590_vm1, %v597_v43 }
 0x37f   :  { %777 = vmatpush1.bf16.msra.mxu1 %v1323_v42  ;;  %808 = vmatprep.mubr.bf16.mxu1 %v1721_v58 }
 0x380   :  { %778 = vmatprep.subr.bf16.mxu1 %v1328_v44 }
 0x383   :  { %779 = vmatpush1.bf16.msra.mxu1 %v1326_v45 }
 0x384   :  { %780 = vmatprep.subr.bf16.mxu1 %v1331_v46 }
 0x387   :  { %781 = vmatpush1.bf16.msra.mxu1 %v1329_v47 }
 0x388   :  { %782 = vmatprep.subr.bf16.mxu1 %v1334_v48 }
 0x38b   :  { %783 = vmatpush1.bf16.msra.mxu1 %v1332_v49 }
 0x38c   :  { %784 = vmatprep.subr.bf16.mxu1 %v1337_v50 }
 0x38f   :  { %785 = vmatpush1.bf16.msra.mxu1 %v1335_v51 }
 0x390   :  { %786 = vmatprep.subr.bf16.mxu1 %v1340_v52 }
 0x393   :  { %787 = vmatpush1.bf16.msra.mxu1 %v1338_v53 }
 0x394   :  { %788 = vmatprep.subr.bf16.mxu1 %v1343_v54 }
 0x397   :  { %789 = vmatpush1.bf16.msra.mxu1 %v1341_v55 }
 0x398   :  { %790 = vmatprep.subr.bf16.mxu1 %v1346_v56 }
 0x39b   :  { %791 = vmatpush1.bf16.msra.mxu1 %v1344_v57 }
 0x3da   :  { %v973_v59 = vpop.permute.xlu0 %972 }
 0x3db   :  { %v978_v61 = vsel %vm590_vm1, %v973_v59, 0.0 }
 0x3de   :  { %v975_v60 = vpop.permute.xlu1 %974 }
 0x3df   :  { %v979_v62 = vsel %vm590_vm1, %v975_v60, 0.0 }
 0x3e0   :  { %v980_v63 = vadd.f32 %v979_v62, %v978_v61 }
 0x3e2   :  { %981 = vadd.xlane.f32.xlu1 %v980_v63 }
 0x43e   :  { %v658_v2 = vpop.f32.mrf.mxu1 }
 0x43f   :  { %v659_v4 = vadd.f32 %v1143_v1, %v658_v2 }
 0x440   :  { %v1257_v3 = vpop.f32.mrf.mxu1 }
 0x441   :  { %v665_v8 = vmax.f32 %v659_v4, 0.0 }
 0x442   :  { %v661_v5 = vpop.f32.mrf.mxu1 }
 0x443   :  { %v662_v6 = vadd.f32 %v1143_v1, %v661_v5  ;;  %v859_v1 = vld [vmem:[#allocation6] sm:$0xff] }
 0x444   :  { %v1258_v7 = vpop.f32.mrf.mxu1 }
 0x445   :  { %v666_v9 = vmax.f32 %v662_v6, 0.0 }
 0x447   :  { %v667_v10 = vpack.c.bf16 %v666_v9, %v665_v8  ;;  %v860_v8 = vld [vmem:[#allocation6 + $0x8] sm:$0xff] }
 0x449   :  { %809 = vmatmul.mubr.bf16.vlgmr.msra.gmra.mxu1 %v667_v10 }
 0x509   :  { %v810_v20 = vpop.f32.mrf.mxu1 }
 0x50a   :  { %v811_v21 = vadd.f32 %v810_v20, %v689_v18 }
 0x50b   :  { %v812_v22 = vpop.f32.mrf.mxu1 }
 0x50c   :  { %v819_v25 = vmul.f32 0.5, %v811_v21  ;;  %v813_v26 = vadd.f32 %v812_v22, %v693_v19 }
 0x50d   :  { %v814_v27 = vpop.f32.mrf.mxu1 }
 0x50e   :  { %1355 = vtanh.f32 %v819_v25  ;;  %v820_v28 = vmul.f32 0.5, %v813_v26  ;;  %v815_v29 = vadd.f32 %v814_v27, %v689_v18  ;;  %v861_v26 = vld [vmem:[#allocation6 + $0x10] sm:$0xff]  ;;  %v862_v27 = vld [vmem:[#allocation6 + $0x18] sm:$0xff] }
 0x50f   :  { %v816_v30 = vpop.f32.mrf.mxu1 }
 0x510   :  { %1357 = vtanh.f32 %v820_v28  ;;  %v821_v31 = vmul.f32 0.5, %v815_v29  ;;  %v817_v32 = vadd.f32 %v816_v30, %v693_v19 }
 0x512   :  { %1359 = vtanh.f32 %v821_v31  ;;  %v822_v33 = vmul.f32 0.5, %v817_v32 }
 0x514   :  { %1361 = vtanh.f32 %v822_v33 }
 0x515   :  { %1363 = vtanh.f32 %v880_v34 }
 0x516   :  { %1365 = vtanh.f32 %v882_v35 }
 0x517   :  { %1367 = vtanh.f32 %v879_v37 }
 0x518   :  { %1369 = vtanh.f32 %v881_v38 }
 0x51b   :  { %v1356_v36 = vpop.eup %1355 }
 0x51c   :  { %v827_v39 = vadd.f32 1.0, %v1356_v36 }
 0x51d   :  { %v1358_v40 = vpop.eup %1357 }
 0x51e   :  { %v831_v41 = vmul.f32 0.5, %v827_v39  ;;  %v828_v42 = vadd.f32 1.0, %v1358_v40 }
 0x51f   :  { %v1360_v43 = vpop.eup %1359 }
 0x520   :  { %v835_v44 = vmul.f32 0.5, %v831_v41  ;;  %851 = vst [vmem:[#allocation20] sm:$0xff] %v831_v41  ;;  %v832_v45 = vmul.f32 0.5, %v828_v42  ;;  %1371 = vlog2.f32 %v831_v41  ;;  %v829_v13 = vadd.f32 1.0, %v1360_v43 }
 0x521   :  { %v1362_v12 = vpop.eup %1361  ;;  %v907_v48 = vsub.f32 1.0, %v831_v41 }
 0x522   :  { %1373 = vtanh.f32 %v835_v44  ;;  %v836_v46 = vmul.f32 0.5, %v832_v45  ;;  %852 = vst [vmem:[#allocation20 + $0x8] sm:$0xff] %v832_v45  ;;  %v830_v23 = vadd.f32 1.0, %v1362_v12  ;;  %v833_v24 = vmul.f32 0.5, %v829_v13  ;;  %v1364_v54 = vpop.eup %1363 }
 0x523   :  { %1375 = vlog2.f32 %v832_v45  ;;  %v908_v50 = vsub.f32 1.0, %v832_v45  ;;  %v1366_v55 = vpop.eup %1365  ;;  %v888_v63 = vadd.f32 1.0, %v1364_v54 }
 0x524   :  { %1377 = vtanh.f32 %v836_v46  ;;  %v834_v47 = vmul.f32 0.5, %v830_v23  ;;  %v837_v49 = vmul.f32 0.5, %v833_v24  ;;  %853 = vst [vmem:[#allocation20 + $0x10] sm:$0xff] %v833_v24  ;;  %v909_v52 = vsub.f32 1.0, %v833_v24  ;;  %v1368_v56 = vpop.eup %1367 }
 0x525   :  { %1379 = vlog2.f32 %v833_v24  ;;  %v1370_v57 = vpop.eup %1369  ;;  %v887_v3 = vadd.f32 1.0, %v1368_v56  ;;  %v890_v10 = vadd.f32 1.0, %v1366_v55  ;;  %v892_v16 = vmul.f32 0.5, %v888_v63 }
 0x526   :  { %v838_v51 = vmul.f32 0.5, %v834_v47  ;;  %854 = vst [vmem:[#allocation20 + $0x18] sm:$0xff] %v834_v47  ;;  %1381 = vlog2.f32 %v834_v47  ;;  %v910_v53 = vsub.f32 1.0, %v834_v47  ;;  %v889_v4 = vadd.f32 1.0, %v1370_v57 }
 0x527   :  { %1383 = vtanh.f32 %v837_v49  ;;  %v891_v21 = vmul.f32 0.5, %v887_v3  ;;  %v894_v23 = vmul.f32 0.5, %v890_v10 }
 0x528   :  { %1385 = vtanh.f32 %v838_v51  ;;  %v893_v22 = vmul.f32 0.5, %v889_v4 }
 0x529   :  { %1387 = vlog2.f32 %v907_v48 }
 0x52a   :  { %1389 = vlog2.f32 %v908_v50 }
 0x52b   :  { %1391 = vlog2.f32 %v909_v52 }
 0x52c   :  { %1393 = vlog2.f32 %v910_v53 }
 0x52d   :  { %v1372_v58 = vpop.eup %1371 }
 0x52e   :  { %v896_v11 = vmul.f32 0.6931472, %v1372_v58 }
 0x52f   :  { %v1374_v59 = vpop.eup %1373 }
 0x530   :  { %v1376_v60 = vpop.eup %1375  ;;  %v843_v61 = vadd.f32 1.0, %v1374_v59  ;;  %v903_v35 = vmax.f32 %v896_v11, -100.0 }
 0x531   :  { %v1378_v62 = vpop.eup %1377  ;;  %v898_v17 = vmul.f32 0.6931472, %v1376_v60 }
 0x532   :  { %v1380_v2 = vpop.eup %1379  ;;  %v844_v5 = vadd.f32 1.0, %v1378_v62  ;;  %v847_v6 = vmul.f32 0.5, %v843_v61 }
 0x533   :  { %v1382_v7 = vpop.eup %1381  ;;  %v900_v29 = vmul.f32 0.6931472, %v1380_v2  ;;  %v904_v39 = vmax.f32 %v898_v17, -100.0 }
 0x534   :  { %v1384_v9 = vpop.eup %1383  ;;  %v848_v14 = vmul.f32 0.5, %v844_v5  ;;  %vm863_vm2 = vcmp.lt.f32.partialorder %v859_v1, %v847_v6  ;;  %855 = vst [vmem:[#allocation17] sm:$0xff] %v847_v6  ;;  %v902_v34 = vmul.f32 0.6931472, %v1382_v7 }
 0x535   :  { %v1386_v15 = vpop.eup %1385  ;;  %v845_v18 = vadd.f32 1.0, %v1384_v9  ;;  %v1163_v19 = vsel %vm863_vm2, 1.0, %v1717_v0  ;;  %v905_v45 = vmax.f32 %v900_v29, -100.0 }
 0x536   :  { %v1388_v20 = vpop.eup %1387  ;;  %v846_v25 = vadd.f32 1.0, %v1386_v15  ;;  %vm864_vm3 = vcmp.lt.f32.partialorder %v860_v8, %v848_v14  ;;  %875 = vst [vmem:[#allocation18] sm:$0xff] %v1163_v19  ;;  %856 = vst [vmem:[#allocation17 + $0x8] sm:$0xff] %v848_v14  ;;  %v906_v24 = vmax.f32 %v902_v34, -100.0 }
 0x537   :  { %v1390_v28 = vpop.eup %1389  ;;  %v912_v30 = vmul.f32 0.6931472, %v1388_v20  ;;  %v849_v31 = vmul.f32 0.5, %v845_v18  ;;  %v1164_v32 = vsel %vm864_vm3, 1.0, %v1717_v0 }
 0x538   :  { %v1392_v33 = vpop.eup %1391  ;;  %v914_v36 = vmul.f32 0.6931472, %v1390_v28  ;;  %v850_v37 = vmul.f32 0.5, %v846_v25  ;;  %876 = vst [vmem:[#allocation18 + $0x8] sm:$0xff] %v1164_v32 }
 0x539   :  { %v1394_v38 = vpop.eup %1393  ;;  %v916_v40 = vmul.f32 0.6931472, %v1392_v33  ;;  %v919_v41 = vmax.f32 %v912_v30, -100.0  ;;  %vm865_vm4 = vcmp.lt.f32.partialorder %v861_v26, %v849_v31  ;;  %857 = vst [vmem:[#allocation17 + $0x10] sm:$0xff] %v849_v31 }
 0x53a   :  { %v918_v42 = vmul.f32 0.6931472, %v1394_v38  ;;  %v920_v43 = vmax.f32 %v914_v36, -100.0  ;;  %vm866_vm5 = vcmp.lt.f32.partialorder %v862_v27, %v850_v37  ;;  %v1165_v44 = vsel %vm865_vm4, 1.0, %v1717_v0  ;;  %858 = vst [vmem:[#allocation17 + $0x18] sm:$0xff] %v850_v37 }
 0x53b   :  { %v921_v12 = vmax.f32 %v916_v40, -100.0  ;;  %v923_v13 = vsub.f32 %v903_v35, %v919_v41  ;;  %v1166_v46 = vsel %vm866_vm5, 1.0, %v1717_v0  ;;  %877 = vst [vmem:[#allocation18 + $0x10] sm:$0xff] %v1165_v44 }
 0x53c   :  { %v922_v47 = vmax.f32 %v918_v42, -100.0  ;;  %v924_v48 = vsub.f32 %v904_v39, %v920_v43  ;;  %878 = vst [vmem:[#allocation18 + $0x18] sm:$0xff] %v1166_v46 }
 0x53d   :  { %v925_v49 = vsub.f32 %v905_v45, %v921_v12  ;;  %v927_v50 = vmul.f32 %v923_v13, %v891_v21 }
 0x53e   :  { %v926_v51 = vsub.f32 %v906_v24, %v922_v47  ;;  %v928_v52 = vmul.f32 %v924_v48, %v892_v16 }
 0x53f   :  { %v929_v53 = vmul.f32 %v925_v49, %v893_v22  ;;  %v931_v55 = vadd.f32 %v927_v50, %v919_v41 }
 0x540   :  { %v930_v54 = vmul.f32 %v926_v51, %v894_v23  ;;  %v932_v56 = vadd.f32 %v928_v52, %v920_v43 }
 0x541   :  { %v933_v57 = vadd.f32 %v929_v53, %v921_v12 }
 0x542   :  { %v934_v58 = vadd.f32 %v930_v54, %v922_v47  ;;  %v935_v59 = vadd.f32 %v932_v56, %v931_v55 }
 0x544   :  { %v936_v60 = vadd.f32 %v935_v59, %v933_v57 }
 0x546   :  { %v937_v61 = vadd.f32 %v936_v60, %v934_v58 }
 0x548   :  { %938 = vadd.xlane.f32.xlu0 %v937_v61 }
 0x549   :  { %1566 = shalt.err (!%p1563_p2)
}
 0x54a   :  { %s2054_s6 = smov 256   ;;  %s1575_s11 = scalar_lea.vmem %s1038_s23, 256 }
 0x54b   :  { %1019 = dma.vmem_to_hbm [thread:$0]  %s1014_s5, 512, %s2037_s14, [#allocation19], %s2054_s6, %s2054_s6, %s1705_s1  }
 0x54c   :  { %p1576_p3 = scmp.ne.s32.totalorder %s1038_s23, %s1575_s11  ;;  %p1580_p4 = scmp.lt.s32.totalorder %s1038_s23, %s1038_s23 }
 0x54d   :  { %p1581_p5 = scmp.lt.s32.totalorder %s1575_s11, %s1575_s11 }
 0x54f   :  { %p1582_p6 = por %p1581_p5, %p1580_p4 }
 0x551   :  { %p1583_p7 = pnand %p1582_p6, %p1576_p3 }
 0x553   :  { %1586 = shalt.err (!%p1583_p7)
}
 0x554   :  { %1043 = dma.vmem_to_hbm [thread:$0]  %s1038_s23, 256, %s2039_s16, [#allocation22], %s1709_s4, %s1709_s4, %s1710_s25  }
 0x555   :  { %s1724_s28 = smov [#allocation17]   ;;  %s1725_s7 = smov [#allocation20]  }
 0x556   :  { %s1001_s29 = sshll.u32 %s1724_s28, 4  ;;  %s1025_s8 = sshll.u32 %s1725_s7, 4  ;;  %s1002_s29 = int_to_ptr.vmem [resolvable:$true] %s1001_s29  ;;  %s1026_s8 = int_to_ptr.vmem [resolvable:$true] %s1025_s8 }
 0x557   :  { %s1595_s14 = scalar_lea.vmem %s1002_s29, 512  ;;  %p1600_p9 = scmp.lt.s32.totalorder %s1002_s29, %s1002_s29 }
 0x558   :  { %p1596_p8 = scmp.ne.s32.totalorder %s1002_s29, %s1595_s14  ;;  %p1601_p10 = scmp.lt.s32.totalorder %s1595_s14, %s1595_s14 }
 0x55a   :  { %p1602_p11 = por %p1601_p10, %p1600_p9 }
 0x55c   :  { %p1603_p12 = pnand %p1602_p11, %p1596_p8 }
 0x55e   :  { %1606 = shalt.err (!%p1603_p12)
}
 0x55f   :  { %1007 = dma.vmem_to_hbm [thread:$0]  %s1002_s29, 512, %s2036_s13, [#allocation4], %s2054_s6, %s2054_s6, %s1705_s1  }
 0x560   :  { %s1615_s16 = scalar_lea.vmem %s1026_s8, 512  ;;  %p1620_p0 = scmp.lt.s32.totalorder %s1026_s8, %s1026_s8 }
 0x561   :  { %p1616_p13 = scmp.ne.s32.totalorder %s1026_s8, %s1615_s16  ;;  %p1621_p1 = scmp.lt.s32.totalorder %s1615_s16, %s1615_s16 }
 0x563   :  { %p1622_p2 = por %p1621_p1, %p1620_p0 }
 0x565   :  { %p1623_p3 = pnand %p1622_p2, %p1616_p13 }
 0x567   :  { %1626 = shalt.err (!%p1623_p3)
}
 0x568   :  { %1031 = dma.vmem_to_hbm [thread:$0]  %s1026_s8, 512, %s2038_s15, [#allocation19], %s2054_s6, %s2054_s6, %s1705_s1  }
 0x569   :  { %s1726_s9 = smov [#allocation23]   ;;  %s1727_s12 = smov [#allocation24]  }
 0x56a   :  { %s1049_s30 = sshll.u32 %s1726_s9, 4  ;;  %s1061_s5 = sshll.u32 %s1727_s12, 4  ;;  %s1050_s30 = int_to_ptr.vmem [resolvable:$true] %s1049_s30  ;;  %s1062_s5 = int_to_ptr.vmem [resolvable:$true] %s1061_s5 }
 0x56b   :  { %s1635_s13 = scalar_lea.vmem %s1050_s30, 256  ;;  %p1640_p5 = scmp.lt.s32.totalorder %s1050_s30, %s1050_s30 }
 0x56c   :  { %p1636_p4 = scmp.ne.s32.totalorder %s1050_s30, %s1635_s13  ;;  %p1641_p6 = scmp.lt.s32.totalorder %s1635_s13, %s1635_s13 }
 0x56e   :  { %p1642_p7 = por %p1641_p6, %p1640_p5 }
 0x570   :  { %p1643_p8 = pnand %p1642_p7, %p1636_p4 }
 0x572   :  { %1646 = shalt.err (!%p1643_p8)
}
 0x573   :  { %1055 = dma.vmem_to_hbm [thread:$0]  %s1050_s30, 256, %s2040_s17, [#allocation22], %s1709_s4, %s1709_s4, %s1710_s25  }
 0x574   :  { %s1655_s15 = scalar_lea.vmem %s1062_s5, 256  ;;  %p1660_p10 = scmp.lt.s32.totalorder %s1062_s5, %s1062_s5 }
 0x575   :  { %p1656_p9 = scmp.ne.s32.totalorder %s1062_s5, %s1655_s15  ;;  %p1661_p11 = scmp.lt.s32.totalorder %s1655_s15, %s1655_s15 }
 0x577   :  { %p1662_p12 = por %p1661_p11, %p1660_p10 }
 0x579   :  { %p1663_p13 = pnand %p1662_p12, %p1656_p9 }
 0x57b   :  { %1666 = shalt.err (!%p1663_p13)
}
 0x57c   :  { %1067 = dma.vmem_to_hbm [thread:$0]  %s1062_s5, 256, %s2041_s18, [#allocation25], %s1709_s4, %s1709_s4, %s1710_s25   ;;  %v982_v0 = vpop.xlane.xlu1 %981 }
 0x57d   :  { %v983_v62 = vrot.slane %v982_v0, 4  ;;  %s1728_s11 = smov [#allocation26]  }
 0x57f   :  { %v984_v63 = vadd.f32 %v983_v62, %v982_v0 }
 0x581   :  { %v985_v1 = vrot.slane %v984_v63, 2 }
 0x583   :  { %v986_v5 = vadd.f32 %v985_v1, %v984_v63 }
 0x585   :  { %v987_v8 = vrot.slane %v986_v5, 1 }
 0x587   :  { %v988_v11 = vadd.f32 %v987_v8, %v986_v5 }
 0x5d1   :  { %v939_v2 = vpop.xlane.xlu0 %938 }
 0x5d2   :  { %v940_v3 = vrot.slane %v939_v2, 4 }
 0x5d4   :  { %v941_v4 = vadd.f32 %v940_v3, %v939_v2 }
 0x5d6   :  { %v942_v6 = vrot.slane %v941_v4, 2 }
 0x5d8   :  { %v943_v7 = vadd.f32 %v942_v6, %v941_v4 }
 0x5da   :  { %v944_v9 = vrot.slane %v943_v7, 1 }
 0x5dc   :  { %v945_v10 = vadd.f32 %v944_v9, %v943_v7 }
 0x5de   :  { %1259 = vpush %v945_v10 }
 0x5df   :  { %1261 = vpush %v988_v11 }
 0x60f   :  { %s1260_s17 = spop %1259 }
 0x610   :  { %s1262_s6 = spop %1261  ;;  %s947_s4 = ssub.f32 0.0, %s1260_s17 }
 0x611   :  { %s990_s21 = smul.f32 0.5, %s1262_s6 }
 0x613   :  { %s1167_s18 = sadd.f32 -256.0, %s990_s21 }
 0x615   :  { %s992_s25 = smul.f32 0.0625, %s1167_s18 }
 0x617   :  { %s993_s10 = sadd.f32 %s992_s25, %s947_s4 }
 0x619   :  { %995 = sst [smem:[#allocation26]] %s993_s10 }
 0x61a   :  { %1075 = dma.smem_to_hbm %s1728_s11, 16, %s2042_s19, [#allocation5]  }
 0x61b   :  { %1693 = dma.done.wait [#allocation4], 512  }
 0x61c   :  { %1694 = vsyncadd [#allocation4], 4294966784 }
 0x61d   :  { %1695 = dma.done.wait [#allocation19], 1024  }
 0x61e   :  { %1696 = vsyncadd [#allocation19], 4294966272 }
 0x61f   :  { %1697 = dma.done.wait [#allocation22], 512  }
 0x620   :  { %1698 = vsyncadd [#allocation22], 4294966784 }
 0x621   :  { %1699 = dma.done.wait [#allocation25], 256  }
 0x622   :  { %1700 = vsyncadd [#allocation25], 4294967040 }
 0x623   :  { %1701 = dma.done.wait [#allocation5], 16  }
 0x624   :  { %1702 = vsyncadd [#allocation5], 4294967280 }
 0x625   :  { %1097 = sfence }
 0x626   :  { %1098 = vsyncpa [#allocation3], 1 }
 0x627   :  { %1099 = vsyncpa [#allocation7], 1 }
 0x628   :  { %1100 = vsyncpa [#allocation10], 1 }
 0x629   :  { %1101 = vsyncpa [#allocation13], 1 }
 0x62a   :  { %1102 = vsyncpa [#allocation16], 1 }
 0x62b   :  { %1103 = vsyncpa [#allocation4], 1 }
 0x62c   :  { %1104 = vsyncpa [#allocation19], 1 }
 0x62d   :  { %1105 = vsyncpa [#allocation22], 1 }
 0x62e   :  { %1106 = vsyncpa [#allocation25], 1 }
 0x62f   :  { %1107 = vsyncpa [#allocation5], 1 }

</bundles_post_ra>
